<compile_context>
chip_gen: v6e
topology: v6e:2x2x1
jax: 0.10.0
libtpu: 0.0.40
codegen_flags: <defaults>
</compile_context>

<pallas_src>
import jax
import jax.numpy as jnp
from jax.experimental import pallas as pl
from jax.experimental.pallas import tpu as pltpu


def _linear31_kernel(params_ref, x_ref, o_ref):
    # params_ref: (4,) f32 in SMEM -> [w0, w1, w2, b]
    # x_ref:      (3, TILE_R, C) f32 in VMEM, feature-major slab
    # o_ref:      (TILE_R, C)    f32 in VMEM, lane- and sublane-dense output
    w0 = params_ref[0]
    w1 = params_ref[1]
    w2 = params_ref[2]
    b = params_ref[3]

    # Pure VPU multiply-add chain on full (TILE_R, C) tiles; f32 accumulate.
    o_ref[...] = w0 * x_ref[0] + w1 * x_ref[1] + w2 * x_ref[2] + b


def linear31_pallas_feature_major(xt, weight, bias, *,
                                  tile_rows=512, lane_cols=512,
                                  vmem_limit_bytes=None):
    """Pallas forward for nn.Linear(3, 1) on feature-major input.

    xt:     (3, n_pad) float32, feature-major; n_pad % lane_cols == 0
    weight: (1, 3) float32 (PyTorch (out_features, in_features) layout)
    bias:   (1,)   float32
    returns (n_pad,) float32 flat outputs (sample order preserved)
    """
    f, n_pad = xt.shape
    assert f == 3
    assert n_pad % lane_cols == 0 and lane_cols % 128 == 0

    rows = n_pad // lane_cols
    # Block second-to-last dim must be a multiple of 8 or equal the full dim.
    if rows <= tile_rows:
        tile_r = rows                       # single row-block (== full extent)
    else:
        tile_r = max(8, (tile_rows // 8) * 8)
    grid_r = pl.cdiv(rows, tile_r)          # ragged last block is masked

    # Free reshape (contiguous, same element order): (3, n_pad) -> (3, R, C).
    x3 = xt.reshape(f, rows, lane_cols).astype(jnp.float32)

    # Pack [w0, w1, w2, b] into one SMEM scalar vector.
    params = jnp.concatenate(
        [weight.reshape(-1), bias.reshape(-1)]).astype(jnp.float32)

    y2d = pl.pallas_call(
        _linear31_kernel,
        out_shape=jax.ShapeDtypeStruct((rows, lane_cols), jnp.float32),
        grid=(grid_r,),
        in_specs=[
            # scalars -> SMEM, whole array, no tiling
            pl.BlockSpec(memory_space=pltpu.MemorySpace.SMEM),
            # x slab: full feature dim (3), dense (TILE_R, C) planes
            pl.BlockSpec((f, tile_r, lane_cols), lambda i: (0, i, 0)),
        ],
        out_specs=pl.BlockSpec((tile_r, lane_cols), lambda i: (i, 0)),
        compiler_params=pltpu.CompilerParams(
            # Independent row-blocks -> shard across both TCs on v7x
            # (no-op on single-TC v5e/v6e).
            dimension_semantics=("parallel",),
            vmem_limit_bytes=vmem_limit_bytes,
        ),
    )(params, x3)

    # Free reshape back to flat sample order.
    return y2d.reshape(-1)


def multivar_linear_regression_pallas(x, weight, bias, *,
                                      tile_rows=512, lane_cols=512,
                                      vmem_limit_bytes=None):
    """Pallas forward for nn.Linear(3, 1) on row-major (N, 3) input.

    Note: row-major input requires one wrapper-side transpose pass; producers
    that already have feature-major (3, N) data should call
    linear31_pallas_feature_major directly and skip it.
    """
    n, f = x.shape
    out_features = weight.shape[0]
    assert f == 3 and out_features == 1

    # Bounded padding: pad N to a small fixed multiple (8 sublanes * C lanes),
    # NOT to a multiple of the (possibly large) tile.
    pad_mult = 8 * lane_cols
    n_pad = ((n + pad_mult - 1) // pad_mult) * pad_mult

    x_p = x.astype(jnp.float32)
    if n_pad != n:
        x_p = jnp.pad(x_p, ((0, n_pad - n), (0, 0)))
    xt = x_p.T  # one transpose pass; fused with the pad by XLA

    y_flat = linear31_pallas_feature_major(
        xt, weight, bias,
        tile_rows=tile_rows, lane_cols=lane_cols,
        vmem_limit_bytes=vmem_limit_bytes)

    # Back to the PyTorch output layout (N, 1).
    return y_flat[:n].reshape(n, out_features)


def multivar_linear_regression(x, weight, bias, *, prefer_pallas=False,
                               **pallas_kwargs):
    """Dispatcher. For row-major (N, 3) inputs the fused XLA matmul is a
    single ~16N-byte HBM pass and beats the Pallas path (which needs an extra
    transpose/layout pass) at essentially every N, so XLA is the default.
    Set prefer_pallas=True (e.g. when benchmarking the kernel, or wire
    feature-major producers to linear31_pallas_feature_major); tuning kwargs
    (tile_rows, lane_cols, vmem_limit_bytes) are forwarded."""
    if not prefer_pallas:
        return x @ weight.T + bias
    return multivar_linear_regression_pallas(x, weight, bias, **pallas_kwargs)


if __name__ == "__main__":
    key = jax.random.PRNGKey(0)
    kx, kw, kb = jax.random.split(key, 3)

    # Small shapes consistent with the module: batch of 1000 samples,
    # 3 features (exercises the pad path 1000 -> 4096, single grid step).
    N, F, OUT = 1000, 3, 1
    x = jax.random.normal(kx, (N, F), dtype=jnp.float32)

    # nn.Linear default init: U(-1/sqrt(fan_in), 1/sqrt(fan_in)), fan_in = 3.
    bound = 1.0 / jnp.sqrt(jnp.float32(F))
    weight = jax.random.uniform(kw, (OUT, F), dtype=jnp.float32,
                                minval=-bound, maxval=bound)
    bias = jax.random.uniform(kb, (OUT,), dtype=jnp.float32,
                              minval=-bound, maxval=bound)

    # Run the Pallas kernel directly (the dispatcher would pick fused XLA at
    # this toy size, which is the right call in production).
    y = multivar_linear_regression_pallas(x, weight, bias)
    jax.block_until_ready(y)

    y_ref = x @ weight.T + bias
    assert y.shape == (N, OUT)
    assert jnp.allclose(y, y_ref, atol=1e-5, rtol=1e-5)

    # Also exercise the multi-tile + ragged-edge path at a still-small size by
    # shrinking tile_rows explicitly (rows=40, tile_r=16 -> 3 blocks, last one
    # masked).
    N2 = 20_000
    x2 = jax.random.normal(jax.random.PRNGKey(1), (N2, F), dtype=jnp.float32)
    y2 = multivar_linear_regression_pallas(x2, weight, bias,
                                           tile_rows=16, lane_cols=512)
    jax.block_until_ready(y2)
    assert y2.shape == (N2, OUT)
    assert jnp.allclose(y2, x2 @ weight.T + bias, atol=1e-5, rtol=1e-5)

    print("KERNEL_OK")
</pallas_src>

<mosaic_0001>
module attributes {stable_mosaic.version = 11 : i64} {
  func.func @_linear31_kernel(%arg0: i32, %arg1: memref<4xf32, #tpu.memory_space<smem>>, %arg2: memref<3x8x512xf32, #tpu.memory_space<vmem>>, %arg3: memref<8x512xf32, #tpu.memory_space<vmem>>) attributes {dimension_semantics = [#tpu.dimension_semantics<parallel>], iteration_bounds = array<i64: 1>, scalar_prefetch = 0 : i64, scratch_operands = 0 : i64, tpu.core_type = #tpu.core_type<tc>, window_params = [{transform_indices = @transform_0, window_bounds = array<i64: 4>}, {transform_indices = @transform_1, window_bounds = array<i64: 3, 8, 512>}, {transform_indices = @transform_2, window_bounds = array<i64: 8, 512>}]} {
    %c0 = arith.constant 0 : index
    %0 = memref.load %arg1[%c0] : memref<4xf32, #tpu.memory_space<smem>>
    %c1 = arith.constant 1 : index
    %1 = memref.load %arg1[%c1] : memref<4xf32, #tpu.memory_space<smem>>
    %c2 = arith.constant 2 : index
    %2 = memref.load %arg1[%c2] : memref<4xf32, #tpu.memory_space<smem>>
    %c3 = arith.constant 3 : index
    %3 = memref.load %arg1[%c3] : memref<4xf32, #tpu.memory_space<smem>>
    %c0_0 = arith.constant 0 : index
    %c0_1 = arith.constant 0 : index
    %c0_2 = arith.constant 0 : index
    %4 = vector.load %arg2[%c0_0, %c0_1, %c0_2] : memref<3x8x512xf32, #tpu.memory_space<vmem>>, vector<1x8x512xf32>
    %5 = vector.shape_cast %4 : vector<1x8x512xf32> to vector<8x512xf32>
    %6 = vector.broadcast %0 : f32 to vector<8x512xf32>
    %7 = arith.mulf %6, %5 : vector<8x512xf32>
    %c1_3 = arith.constant 1 : index
    %c0_4 = arith.constant 0 : index
    %c0_5 = arith.constant 0 : index
    %8 = vector.load %arg2[%c1_3, %c0_4, %c0_5] : memref<3x8x512xf32, #tpu.memory_space<vmem>>, vector<1x8x512xf32>
    %9 = vector.shape_cast %8 : vector<1x8x512xf32> to vector<8x512xf32>
    %10 = vector.broadcast %1 : f32 to vector<8x512xf32>
    %11 = arith.mulf %10, %9 : vector<8x512xf32>
    %12 = arith.addf %7, %11 : vector<8x512xf32>
    %c2_6 = arith.constant 2 : index
    %c0_7 = arith.constant 0 : index
    %c0_8 = arith.constant 0 : index
    %13 = vector.load %arg2[%c2_6, %c0_7, %c0_8] : memref<3x8x512xf32, #tpu.memory_space<vmem>>, vector<1x8x512xf32>
    %14 = vector.shape_cast %13 : vector<1x8x512xf32> to vector<8x512xf32>
    %15 = vector.broadcast %2 : f32 to vector<8x512xf32>
    %16 = arith.mulf %15, %14 : vector<8x512xf32>
    %17 = arith.addf %12, %16 : vector<8x512xf32>
    %18 = vector.broadcast %3 : f32 to vector<8x512xf32>
    %19 = arith.addf %17, %18 : vector<8x512xf32>
    %c0_9 = arith.constant 0 : index
    %c0_10 = arith.constant 0 : index
    %20 = vector.load %arg3[%c0_9, %c0_10] : memref<8x512xf32, #tpu.memory_space<vmem>>, vector<8x512xf32>
    tpu.vector_store %arg3[%c0_9, %c0_10], %19 {strides = array<i32>} : memref<8x512xf32, #tpu.memory_space<vmem>>, vector<8x512xf32>,
    return
  }
  func.func @transform_0(%arg0: i32) -> i32 {
    %c0_i32 = arith.constant 0 : i32
    %c0_i32_0 = arith.constant 0 : i32
    return %c0_i32 : i32
  }
  func.func @transform_1(%arg0: i32) -> (i32, i32, i32) {
    %c0_i32 = arith.constant 0 : i32
    %c0_i32_0 = arith.constant 0 : i32
    %c0_i32_1 = arith.constant 0 : i32
    return %c0_i32, %arg0, %c0_i32_0 : i32, i32, i32
  }
  func.func @transform_2(%arg0: i32) -> (i32, i32) {
    %c0_i32 = arith.constant 0 : i32
    %c0_i32_0 = arith.constant 0 : i32
    return %arg0, %c0_i32 : i32, i32
  }
}

</mosaic_0001>

<bundles_post_ra>
// kernel: tpu_custom_call.1
= control target key start
LH: loop header
LB: loop body
LE: loop exit
PB: predicated region body
PF: predicated region fallthrough
CT: control target
= control target key end

     0   :  { %7 = vsyncpa [#allocation5], 0  ;;  %s194_s0 = inlined_call_operand.hbm [shape: f32[4], index: 0, kind: input, shape index: {}]   ;;  %s195_s1 = inlined_call_operand.hbm [shape: f32[3,8,512], index: 1, kind: input, shape index: {}]   ;;  %s196_s2 = inlined_call_operand.hbm [shape: f32[8,512], index: 2, kind: output, shape index: {}]  }
   0x1   :  { %8 = vsyncpa [#allocation3], 0 }
   0x2   :  { %9 = vsyncpa [#allocation4], 0  ;;  %s165_s9 = smov [#allocation2]   ;;  %s166_s12 = smov [#allocation6]  }
   0x3   :  { %17 = dma.hbm_to_smem %s194_s0, 16, %s165_s9, [#allocation5]  }
   0x4   :  { %s23_s13 = sshll.u32 %s166_s12, 4  ;;  %s24_s13 = int_to_ptr.vmem [resolvable:$true] %s23_s13 }
   0x5   :  { %s127_s14 = scalar_lea.vmem %s24_s13, 1536  ;;  %p132_p1 = scmp.lt.s32.totalorder %s24_s13, %s24_s13 }
   0x6   :  { %p128_p0 = scmp.ne.s32.totalorder %s24_s13, %s127_s14  ;;  %p133_p2 = scmp.lt.s32.totalorder %s127_s14, %s127_s14 }
   0x8   :  { %p134_p3 = por %p133_p2, %p132_p1 }
   0xa   :  { %p135_p4 = pnand %p134_p3, %p128_p0 }
   0xc   :  { %138 = shalt.err (!%p135_p4)
}
   0xd   :  { %s167_s15 = smov 512   ;;  %s168_s16 = smov 32  }
   0xe   :  { %29 = dma.hbm_to_vmem [thread:$0]  %s195_s1, 1536, %s24_s13, [#allocation3], %s167_s15, %s167_s15, %s168_s16  }
   0xf   :  { %159 = dma.done.wait [#allocation5], 16  }
  0x10   :  { %160 = vsyncadd [#allocation5], 4294967280 }
  0x11   :  { %161 = dma.done.wait [#allocation3], 1536  }
  0x12   :  { %162 = vsyncadd [#allocation3], 4294965760 }
  0x13   :  { %36 = sfence }
  0x14   :  { %s37_s0 = sld [smem:[#allocation2]]  ;;  %v41_v0 = vld [vmem:[#allocation6] sm:$0xff]  ;;  %v42_v1 = vld [vmem:[#allocation6 + $0x8] sm:$0xff]  ;;  %v43_v2 = vld [vmem:[#allocation6 + $0x10] sm:$0xff]  ;;  %s169_s1 = smov [#allocation7]  }
  0x15   :  { %s103_s19 = sld [smem:[#allocation2 + $0x1]]  ;;  %v51_v3 = vld [vmem:[#allocation6 + $0x20] sm:$0xff]  ;;  %v52_v4 = vld [vmem:[#allocation6 + $0x28] sm:$0xff]  ;;  %v53_v5 = vld [vmem:[#allocation6 + $0x30] sm:$0xff]  ;;  %s93_s22 = sshll.u32 %s169_s1, 4  ;;  %s94_s22 = int_to_ptr.vmem [resolvable:$true] %s93_s22 }
  0x16   :  { %s104_s20 = sld [smem:[#allocation2 + $0x2]]  ;;  %v65_v7 = vld [vmem:[#allocation6 + $0x40] sm:$0xff]  ;;  %v66_v8 = vld [vmem:[#allocation6 + $0x48] sm:$0xff]  ;;  %v67_v9 = vld [vmem:[#allocation6 + $0x50] sm:$0xff]  ;;  %s139_s23 = scalar_lea.vmem %s94_s22, 512 }
  0x17   :  { %s105_s21 = sld [smem:[#allocation2 + $0x3]]  ;;  %v44_v14 = vld [vmem:[#allocation6 + $0x18] sm:$0xff]  ;;  %p140_p5 = scmp.ne.s32.totalorder %s94_s22, %s139_s23 }
  0x18   :  { %v54_v19 = vld [vmem:[#allocation6 + $0x38] sm:$0xff]  ;;  %p144_p6 = scmp.lt.s32.totalorder %s94_s22, %s94_s22  ;;  %p145_p7 = scmp.lt.s32.totalorder %s139_s23, %s139_s23 }
  0x19   :  { %v68_v20 = vld [vmem:[#allocation6 + $0x58] sm:$0xff] }
  0x1a   :  { %v45_v6 = vstv %s37_s0  ;;  %p146_p8 = por %p145_p7, %p144_p6 }
  0x1b   :  { %v46_v10 = vmul.f32 %v45_v6, %v41_v0  ;;  %v55_v11 = vstv %s103_s19  ;;  %v47_v12 = vmul.f32 %v45_v6, %v42_v1  ;;  %v48_v13 = vmul.f32 %v45_v6, %v43_v2 }
  0x1c   :  { %v56_v15 = vmul.f32 %v55_v11, %v51_v3  ;;  %v69_v16 = vstv %s104_s20  ;;  %v57_v17 = vmul.f32 %v55_v11, %v52_v4  ;;  %v58_v18 = vmul.f32 %v55_v11, %v53_v5  ;;  %p147_p9 = pnand %p146_p8, %p140_p5 }
  0x1d   :  { %v70_v21 = vmul.f32 %v69_v16, %v65_v7  ;;  %v71_v22 = vmul.f32 %v69_v16, %v66_v8  ;;  %v72_v23 = vmul.f32 %v69_v16, %v67_v9  ;;  %v49_v27 = vmul.f32 %v45_v6, %v44_v14 }
  0x1e   :  { %v60_v24 = vadd.f32 %v56_v15, %v46_v10  ;;  %v61_v25 = vadd.f32 %v57_v17, %v47_v12  ;;  %v62_v26 = vadd.f32 %v58_v18, %v48_v13  ;;  %v78_v28 = vstv %s105_s21 }
  0x1f   :  { %v59_v29 = vmul.f32 %v55_v11, %v54_v19  ;;  %v73_v30 = vmul.f32 %v69_v16, %v68_v20 }
  0x20   :  { %v74_v31 = vadd.f32 %v70_v21, %v60_v24  ;;  %v75_v32 = vadd.f32 %v71_v22, %v61_v25  ;;  %v76_v33 = vadd.f32 %v72_v23, %v62_v26 }
  0x21   :  { %v63_v34 = vadd.f32 %v59_v29, %v49_v27 }
  0x22   :  { %v79_v35 = vadd.f32 %v78_v28, %v74_v31  ;;  %v80_v36 = vadd.f32 %v78_v28, %v75_v32  ;;  %v81_v37 = vadd.f32 %v78_v28, %v76_v33 }
  0x23   :  { %v77_v38 = vadd.f32 %v73_v30, %v63_v34 }
  0x24   :  { %83 = vst [vmem:[#allocation7] sm:$0xff] %v79_v35  ;;  %84 = vst [vmem:[#allocation7 + $0x8] sm:$0xff] %v80_v36 }
  0x25   :  { %85 = vst [vmem:[#allocation7 + $0x10] sm:$0xff] %v81_v37  ;;  %v82_v39 = vadd.f32 %v78_v28, %v77_v38 }
  0x27   :  { %86 = vst [vmem:[#allocation7 + $0x18] sm:$0xff] %v82_v39 }
  0x28   :  { %150 = shalt.err (!%p147_p9)
}
  0x29   :  { %96 = dma.vmem_to_hbm [thread:$0]  %s94_s22, 512, %s196_s2, [#allocation4]  }
  0x2a   :  { %163 = dma.done.wait [#allocation4], 512  }
  0x2b   :  { %164 = vsyncadd [#allocation4], 4294966784 }
  0x2c   :  { %100 = vsyncpa [#allocation3], 1 }
  0x2d   :  { %101 = vsyncpa [#allocation4], 1 }
  0x2e   :  { %102 = vsyncpa [#allocation5], 1 }

</bundles_post_ra>
